<compile_context>
chip_gen: v5e
topology: v5e:2x2
jax: 0.10.0
libtpu: 0.0.40
codegen_flags: <defaults>
</compile_context>

<pallas_src>
import functools
import operator

import jax
import jax.numpy as jnp
from jax import lax
from jax.experimental import pallas as pl
from jax.experimental.pallas import tpu as pltpu  # noqa: F401


def graph_attention_kernel(Hp_ref, x_ref, A_ref, Wb_ref, b_ref, out_ref):
    """Single-invocation kernel over packed, lane-dense operands.

    Hp_ref : [B*N, T*D]  H packed per node; lane blocks are the T time steps.
    x_ref  : [B*N, D]    attention query per node.
    A_ref  : [B*N, B*N]  block-diagonal normalized adjacency (A_hat per batch).
    Wb_ref : [T*D, T*D]  block-diagonal GCN weight = kron(I_T, W).
    b_ref  : [1, D]      GCN bias.
    out_ref: [B*N, D]
    """
    BN, TD = Hp_ref.shape
    D = out_ref.shape[-1]
    T = TD // D
    f32 = jnp.float32

    # ---- On-chip selector constants (2-D iota + compares only; no HBM traffic,
    #      no int div/rem, no relayouts).
    # E[j, t] = 1 iff lane j belongs to time block t   (j // D == t)
    rj = lax.broadcasted_iota(jnp.int32, (TD, T), 0)
    ct = lax.broadcasted_iota(jnp.int32, (TD, T), 1)
    E = ((rj >= ct * D) & (rj < (ct + 1) * D)).astype(f32)                 # [TD, T]
    # F[j, d] = 1 iff lane j maps to feature d         (j % D == d)
    ri = lax.broadcasted_iota(jnp.int32, (TD, D), 0)
    cd = lax.broadcasted_iota(jnp.int32, (TD, D), 1)
    F = functools.reduce(operator.or_,
                         [(ri - cd) == t * D for t in range(T)]).astype(f32)  # [TD, D]

    nt = (((1,), (1,)), ((), ()))  # dot_general dims for "A @ B.T" (NT matmul)

    # ---- Lane-tiled copies of x and bias, built with tiny NT matmuls (MXU).
    xT = lax.dot_general(x_ref[...], F, nt, preferred_element_type=f32)       # [BN, TD]
    b_row = lax.dot_general(b_ref[...], F, nt, preferred_element_type=f32)    # [1, TD]

    # ---- GCNConv for all T steps and all batches: two lane-dense MXU matmuls.
    hw = jnp.dot(Hp_ref[...], Wb_ref[...], preferred_element_type=f32)        # [BN, TD]
    agg = jnp.dot(A_ref[...], hw, preferred_element_type=f32)                 # [BN, TD]
    g = jax.nn.sigmoid(agg + b_row)                                           # [BN, TD]

    # ---- Attention logits: scores[n, t] = <x[n], g[n, t*D:(t+1)*D]>.
    scores = jnp.dot(g * xT, E, preferred_element_type=f32)                   # [BN, T]

    # ---- Softmax over T (EUP approximate reciprocal for the normalization).
    m = jnp.max(scores, axis=-1, keepdims=True)
    e = jnp.exp(scores - m)
    inv = pl.reciprocal(jnp.sum(e, axis=-1, keepdims=True), approx=True)
    w = e * inv                                                               # [BN, T]

    # ---- Weighted sum over T, staying in the packed lane-dense layout.
    w_exp = lax.dot_general(w, E, nt, preferred_element_type=f32)             # [BN, TD]
    out = jnp.dot(w_exp * g, F, preferred_element_type=f32)                   # [BN, D]
    out_ref[...] = out.astype(out_ref.dtype)


@jax.jit
def graph_attention(H, x, A_hat, W, bias):
    B, T, N, D = H.shape
    BN, TD = B * N, T * D

    # Wrapper-side layout plumbing only (weight/adjacency block-diagonal packing is a
    # one-time constant transform in a real model; all per-element compute is in-kernel).
    Hp = jnp.transpose(H, (0, 2, 1, 3)).reshape(BN, TD)            # [BN, TD] lane-dense
    x2 = x.reshape(BN, D)                                          # [BN, D]
    A_big = jnp.kron(jnp.eye(B, dtype=A_hat.dtype), A_hat)         # [BN, BN]
    W_block = jnp.kron(jnp.eye(T, dtype=W.dtype), W)               # [TD, TD]
    b2 = bias.reshape(1, D)                                        # [1, D]

    out = pl.pallas_call(
        graph_attention_kernel,
        out_shape=jax.ShapeDtypeStruct((BN, D), jnp.float32),
    )(Hp, x2, A_big, W_block, b2)
    return out.reshape(B, N, D)


def build_gcn_adjacency(N, edge_index):
    """Dense normalized adjacency A_hat = D^-1/2 (A + I) D^-1/2 (PyG gcn_norm)."""
    src, dst = edge_index
    # .add (not .set) so duplicate edges accumulate like gcn_norm's edge weights.
    A = jnp.zeros((N, N), jnp.float32).at[dst, src].add(1.0)
    A = A + jnp.eye(N, dtype=jnp.float32)                          # self loops
    deg = jnp.sum(A, axis=1)
    dinv = 1.0 / jnp.sqrt(deg)
    return A * dinv[:, None] * dinv[None, :]


def reference(H, x, A_hat, W, bias):
    """Pure-JAX reference matching the PyTorch forward."""
    hw = jnp.einsum('btnd,de->btne', H, W)
    g = jax.nn.sigmoid(jnp.einsum('nm,btmd->btnd', A_hat, hw) + bias)   # [B,T,N,D]
    scores = jnp.einsum('bnd,btnd->bnt', x, g)                          # [B,N,T]
    w = jax.nn.softmax(scores, axis=-1)
    return jnp.einsum('bnt,btnd->bnd', w, g)


if __name__ == "__main__":
    B, T, N, D = 2, 4, 16, 32   # batch, hist_len, city_num, hid_dim  (T*D = 128)

    key = jax.random.PRNGKey(0)
    k_h, k_x, k_w, k_b = jax.random.split(key, 4)
    H = jax.random.normal(k_h, (B, T, N, D), jnp.float32)
    x = jax.random.normal(k_x, (B, N, D), jnp.float32)
    W = jax.random.normal(k_w, (D, D), jnp.float32) * 0.1
    bias = jax.random.normal(k_b, (D,), jnp.float32) * 0.1

    # deterministic symmetric ring graph on N nodes (the module's edge_indices)
    idx = jnp.arange(N)
    src = jnp.concatenate([idx, (idx + 1) % N])
    dst = jnp.concatenate([(idx + 1) % N, idx])
    edge_index = jnp.stack([src, dst])
    A_hat = build_gcn_adjacency(N, edge_index)

    out = jax.block_until_ready(graph_attention(H, x, A_hat, W, bias))
    ref = reference(H, x, A_hat, W, bias)
    assert out.shape == (B, N, D)
    # Everything is f32 except the softmax normalization, which uses the EUP
    # approximate reciprocal; tolerance is set by that approximation.
    assert jnp.allclose(out, ref, atol=1e-2, rtol=1e-2), float(jnp.max(jnp.abs(out - ref)))
    print("KERNEL_OK")
</pallas_src>

<mosaic_0001>
module attributes {stable_mosaic.version = 11 : i64} {
  func.func @graph_attention_kernel(%arg0: memref<32x128xf32, #tpu.memory_space<vmem>>, %arg1: memref<32x32xf32, #tpu.memory_space<vmem>>, %arg2: memref<32x32xf32, #tpu.memory_space<vmem>>, %arg3: memref<128x128xf32, #tpu.memory_space<vmem>>, %arg4: memref<1x32xf32, #tpu.memory_space<vmem>>, %arg5: memref<32x32xf32, #tpu.memory_space<vmem>>) attributes {dimension_semantics = [], scalar_prefetch = 0 : i64, scratch_operands = 0 : i64, tpu.core_type = #tpu.core_type<tc>} {
    %0 = tpu.iota {dimensions = array<i32: 0>} : vector<128x4xi32>
    %1 = tpu.iota {dimensions = array<i32: 1>} : vector<128x4xi32>
    %c32_i32 = arith.constant 32 : i32
    %2 = vector.broadcast %c32_i32 : i32 to vector<128x4xi32>
    %3 = arith.muli %1, %2 : vector<128x4xi32>
    %4 = arith.cmpi sge, %0, %3 : vector<128x4xi32>
    %c1_i32 = arith.constant 1 : i32
    %5 = vector.broadcast %c1_i32 : i32 to vector<128x4xi32>
    %6 = arith.addi %1, %5 : vector<128x4xi32>
    %c32_i32_0 = arith.constant 32 : i32
    %7 = vector.broadcast %c32_i32_0 : i32 to vector<128x4xi32>
    %8 = arith.muli %6, %7 : vector<128x4xi32>
    %9 = arith.cmpi slt, %0, %8 : vector<128x4xi32>
    %10 = arith.andi %4, %9 : vector<128x4xi1>
    %11 = arith.extui %10 : vector<128x4xi1> to vector<128x4xi32>
    %12 = arith.sitofp %11 : vector<128x4xi32> to vector<128x4xf32>
    %13 = tpu.iota {dimensions = array<i32: 0>} : vector<128x32xi32>
    %14 = tpu.iota {dimensions = array<i32: 1>} : vector<128x32xi32>
    %15 = arith.subi %13, %14 : vector<128x32xi32>
    %c0_i32 = arith.constant 0 : i32
    %16 = vector.broadcast %c0_i32 : i32 to vector<128x32xi32>
    %17 = arith.cmpi eq, %15, %16 : vector<128x32xi32>
    %18 = arith.subi %13, %14 : vector<128x32xi32>
    %c32_i32_1 = arith.constant 32 : i32
    %19 = vector.broadcast %c32_i32_1 : i32 to vector<128x32xi32>
    %20 = arith.cmpi eq, %18, %19 : vector<128x32xi32>
    %21 = arith.subi %13, %14 : vector<128x32xi32>
    %c64_i32 = arith.constant 64 : i32
    %22 = vector.broadcast %c64_i32 : i32 to vector<128x32xi32>
    %23 = arith.cmpi eq, %21, %22 : vector<128x32xi32>
    %24 = arith.subi %13, %14 : vector<128x32xi32>
    %c96_i32 = arith.constant 96 : i32
    %25 = vector.broadcast %c96_i32 : i32 to vector<128x32xi32>
    %26 = arith.cmpi eq, %24, %25 : vector<128x32xi32>
    %27 = arith.ori %17, %20 : vector<128x32xi1>
    %28 = arith.ori %27, %23 : vector<128x32xi1>
    %29 = arith.ori %28, %26 : vector<128x32xi1>
    %30 = arith.extui %29 : vector<128x32xi1> to vector<128x32xi32>
    %31 = arith.sitofp %30 : vector<128x32xi32> to vector<128x32xf32>
    %c0 = arith.constant 0 : index
    %c0_2 = arith.constant 0 : index
    %32 = vector.load %arg1[%c0, %c0_2] : memref<32x32xf32, #tpu.memory_space<vmem>>, vector<32x32xf32>
    %cst = arith.constant dense<0.000000e+00> : vector<32x128xf32>
    %33 = tpu.matmul %32, %31, %cst {dimension_numbers = #tpu.dot_dimension_numbers<[1], [1], [0], [0], [0, 0, 1, 0], [], []>} : vector<32x32xf32>, vector<128x32xf32>, vector<32x128xf32> -> vector<32x128xf32>
    %c0_3 = arith.constant 0 : index
    %c0_4 = arith.constant 0 : index
    %34 = vector.load %arg4[%c0_3, %c0_4] : memref<1x32xf32, #tpu.memory_space<vmem>>, vector<1x32xf32>
    %cst_5 = arith.constant dense<0.000000e+00> : vector<1x128xf32>
    %35 = tpu.matmul %34, %31, %cst_5 {dimension_numbers = #tpu.dot_dimension_numbers<[1], [1], [0], [0], [0, 0, 1, 0], [], []>} : vector<1x32xf32>, vector<128x32xf32>, vector<1x128xf32> -> vector<1x128xf32>
    %c0_6 = arith.constant 0 : index
    %c0_7 = arith.constant 0 : index
    %36 = vector.load %arg0[%c0_6, %c0_7] : memref<32x128xf32, #tpu.memory_space<vmem>>, vector<32x128xf32>
    %c0_8 = arith.constant 0 : index
    %c0_9 = arith.constant 0 : index
    %37 = vector.load %arg3[%c0_8, %c0_9] : memref<128x128xf32, #tpu.memory_space<vmem>>, vector<128x128xf32>
    %cst_10 = arith.constant dense<0.000000e+00> : vector<32x128xf32>
    %38 = tpu.matmul %36, %37, %cst_10 {dimension_numbers = #tpu.dot_dimension_numbers<[1], [0], [0], [1], [0, 0, 1, 1], [], []>} : vector<32x128xf32>, vector<128x128xf32>, vector<32x128xf32> -> vector<32x128xf32>
    %c0_11 = arith.constant 0 : index
    %c0_12 = arith.constant 0 : index
    %39 = vector.load %arg2[%c0_11, %c0_12] : memref<32x32xf32, #tpu.memory_space<vmem>>, vector<32x32xf32>
    %cst_13 = arith.constant dense<0.000000e+00> : vector<32x128xf32>
    %40 = tpu.matmul %39, %38, %cst_13 {dimension_numbers = #tpu.dot_dimension_numbers<[1], [0], [0], [1], [0, 0, 1, 1], [], []>} : vector<32x32xf32>, vector<32x128xf32>, vector<32x128xf32> -> vector<32x128xf32>
    %41 = vector.broadcast %35 : vector<1x128xf32> to vector<32x128xf32>
    %42 = arith.addf %40, %41 : vector<32x128xf32>
    %43 = arith.negf %42 : vector<32x128xf32>
    %44 = math.exp %43 : vector<32x128xf32>
    %cst_14 = arith.constant 1.000000e+00 : f32
    %45 = vector.broadcast %cst_14 : f32 to vector<32x128xf32>
    %46 = arith.addf %45, %44 : vector<32x128xf32>
    %47 = arith.divf %45, %46 : vector<32x128xf32>
    %48 = arith.mulf %47, %33 : vector<32x128xf32>
    %cst_15 = arith.constant dense<0.000000e+00> : vector<32x4xf32>
    %49 = tpu.matmul %48, %12, %cst_15 {dimension_numbers = #tpu.dot_dimension_numbers<[1], [0], [0], [1], [0, 0, 1, 1], [], []>} : vector<32x128xf32>, vector<128x4xf32>, vector<32x4xf32> -> vector<32x4xf32>
    %cst_16 = arith.constant dense<0xFF800000> : vector<32xf32>
    %50 = vector.multi_reduction <maximumf>, %49, %cst_16 [1] : vector<32x4xf32> to vector<32xf32>
    %51 = vector.shape_cast %50 : vector<32xf32> to vector<32x1xf32>
    %52 = vector.broadcast %51 : vector<32x1xf32> to vector<32x4xf32>
    %53 = arith.subf %49, %52 : vector<32x4xf32>
    %54 = math.exp %53 : vector<32x4xf32>
    %cst_17 = arith.constant dense<0.000000e+00> : vector<32xf32>
    %55 = vector.multi_reduction <add>, %54, %cst_17 [1] : vector<32x4xf32> to vector<32xf32>
    %56 = vector.shape_cast %55 : vector<32xf32> to vector<32x1xf32>
    %57 = tpu.reciprocal %56 {approx = true} : vector<32x1xf32> -> vector<32x1xf32>
    %58 = vector.broadcast %57 : vector<32x1xf32> to vector<32x4xf32>
    %59 = arith.mulf %54, %58 : vector<32x4xf32>
    %cst_18 = arith.constant dense<0.000000e+00> : vector<32x128xf32>
    %60 = tpu.matmul %59, %12, %cst_18 {dimension_numbers = #tpu.dot_dimension_numbers<[1], [1], [0], [0], [0, 0, 1, 0], [], []>} : vector<32x4xf32>, vector<128x4xf32>, vector<32x128xf32> -> vector<32x128xf32>
    %61 = arith.mulf %60, %47 : vector<32x128xf32>
    %cst_19 = arith.constant dense<0.000000e+00> : vector<32x32xf32>
    %62 = tpu.matmul %61, %31, %cst_19 {dimension_numbers = #tpu.dot_dimension_numbers<[1], [0], [0], [1], [0, 0, 1, 1], [], []>} : vector<32x128xf32>, vector<128x32xf32>, vector<32x32xf32> -> vector<32x32xf32>
    %c0_20 = arith.constant 0 : index
    %c0_21 = arith.constant 0 : index
    %63 = vector.load %arg5[%c0_20, %c0_21] : memref<32x32xf32, #tpu.memory_space<vmem>>, vector<32x32xf32>
    tpu.vector_store %arg5[%c0_20, %c0_21], %62 {strides = array<i32>} : memref<32x32xf32, #tpu.memory_space<vmem>>, vector<32x32xf32>,
    return
  }
}

</mosaic_0001>

<bundles_post_ra>
// kernel: graph_attention.1
= control target key start
LH: loop header
LB: loop body
LE: loop exit
PB: predicated region body
PF: predicated region fallthrough
CT: control target
= control target key end

     0   :  { %s1671_s0 = inlined_call_operand.vmem [shape: f32[32,128], index: 0, kind: input, shape index: {}]   ;;  %s1672_s1 = inlined_call_operand.vmem [shape: f32[32,32], index: 1, kind: input, shape index: {}]   ;;  %s1673_s2 = inlined_call_operand.vmem [shape: f32[32,32], index: 2, kind: input, shape index: {}]   ;;  %s1674_s3 = inlined_call_operand.vmem [shape: f32[128,128], index: 3, kind: input, shape index: {}]   ;;  %s1675_s4 = inlined_call_operand.vmem [shape: f32[1,32], index: 4, kind: input, shape index: {}]   ;;  %s1676_s5 = inlined_call_operand.hbm [shape: f32[32,32], index: 5, kind: output, shape index: {}]  }
   0x1   :  { %v420_v0 = vld [vmem:[%s1674_s3 + $0x78] sm:$0xff]  ;;  %v419_v1 = vld [vmem:[%s1674_s3 + $0x70] sm:$0xff]  ;;  %v418_v2 = vld [vmem:[%s1674_s3 + $0x68] sm:$0xff] }
   0x2   :  { %421 = vmatpush.msra.mxu2 %v420_v0  ;;  %v417_v3 = vld [vmem:[%s1674_s3 + $0x60] sm:$0xff]  ;;  %v416_v4 = vld [vmem:[%s1674_s3 + $0x58] sm:$0xff] }
   0x4   :  { %422 = vmatpush.msra.mxu2 %v419_v1 }
   0x6   :  { %423 = vmatpush.msra.mxu2 %v418_v2 }
   0x7   :  { %10 = vsyncpa [#allocation3], 0  ;;  %v415_v5 = vld [vmem:[%s1674_s3 + $0x50] sm:$0xff]  ;;  %v414_v6 = vld [vmem:[%s1674_s3 + $0x48] sm:$0xff]  ;;  %v21_v14 = vlaneseq  ;;  %vm1681_vm8 = vcmask 261120   ;;  %v986_v30 = vmov 0.0  }
   0x8   :  { %424 = vmatpush.msra.mxu2 %v417_v3  ;;  %v413_v7 = vld [vmem:[%s1674_s3 + $0x40] sm:$0xff]  ;;  %v412_v8 = vld [vmem:[%s1674_s3 + $0x38] sm:$0xff]  ;;  %v411_v9 = vld [vmem:[%s1674_s3 + $0x30] sm:$0xff]  ;;  %v1700_v34 = vmov 0  ;;  %s782_s25 = sshll.u32 %s1676_s5, 4  ;;  %s989_s26 = smov 128   ;;  %s783_s25 = int_to_ptr.hbm [resolvable:$true] %s782_s25 }
   0x9   :  { %v410_v10 = vld [vmem:[%s1674_s3 + $0x28] sm:$0xff]  ;;  %v409_v11 = vld [vmem:[%s1674_s3 + $0x20] sm:$0xff]  ;;  %v408_v12 = vld [vmem:[%s1674_s3 + $0x18] sm:$0xff]  ;;  %v1066_v16 = vshrl.u32 %v21_v14, 7  ;;  %v1068_v17 = vand.u32 127, %v21_v14  ;;  %v1724_v14 = vmov 0 }
   0xa   :  { %425 = vmatpush.msra.mxu2 %v416_v4  ;;  %v407_v13 = vld [vmem:[%s1674_s3 + $0x10] sm:$0xff]  ;;  %v406_v15 = vld [vmem:[%s1674_s3 + $0x8] sm:$0xff]  ;;  %v405_v18 = vld [vmem:[%s1674_s3] sm:$0xff]  ;;  %s990_s3 = smov 8  }
   0xb   :  { %v1074_v19 = vadd.s32 120, %v1066_v16  ;;  %v1077_v20 = vadd.s32 112, %v1066_v16  ;;  %v1080_v21 = vadd.s32 104, %v1066_v16  ;;  %v401_v22 = vld [vmem:[%s1671_s0] sm:$0xff]  ;;  %v1092_v26 = vadd.s32 96, %v1066_v16  ;;  %v402_v32 = vld [vmem:[%s1671_s0 + $0x8] sm:$0xff] }
   0xc   :  { %426 = vmatpush.msra.mxu2 %v415_v5  ;;  %v1095_v27 = vadd.s32 88, %v1066_v16  ;;  %v1111_v33 = vadd.s32 80, %v1066_v16  ;;  %v1131_v39 = vadd.s32 72, %v1066_v16  ;;  %v403_v42 = vld [vmem:[%s1671_s0 + $0x10] sm:$0xff]  ;;  %v404_v48 = vld [vmem:[%s1671_s0 + $0x18] sm:$0xff]  ;;  %v1184_v52 = vadd.s32 64, %v1066_v16 }
   0xd   :  { %v138_v23 = vsub.s32 %v1074_v19, %v1068_v17  ;;  %v137_v24 = vsub.s32 %v1077_v20, %v1068_v17  ;;  %v136_v25 = vsub.s32 %v1080_v21, %v1068_v17  ;;  %v135_v29 = vsub.s32 %v1092_v26, %v1068_v17 }
   0xe   :  { %427 = vmatpush.msra.mxu2 %v414_v6  ;;  %v134_v35 = vsub.s32 %v1095_v27, %v1068_v17  ;;  %v133_v38 = vsub.s32 %v1111_v33, %v1068_v17  ;;  %v132_v43 = vsub.s32 %v1131_v39, %v1068_v17  ;;  %v131_v53 = vsub.s32 %v1184_v52, %v1068_v17 }
   0xf   :  { %vm154_vm0 = vcmp.eq.s32.totalorder %v138_v23, 0  ;;  %vm170_vm1 = vcmp.eq.s32.totalorder %v138_v23, 32  ;;  %vm186_vm2 = vcmp.eq.s32.totalorder %v138_v23, 64  ;;  %vm202_vm3 = vcmp.eq.s32.totalorder %v138_v23, 96 }
  0x10   :  { %428 = vmatpush.msra.mxu2 %v413_v7  ;;  %vm218_vm4 = vmor %vm154_vm0, %vm170_vm1  ;;  %vm153_vm5 = vcmp.eq.s32.totalorder %v137_v24, 0  ;;  %vm169_vm6 = vcmp.eq.s32.totalorder %v137_v24, 32  ;;  %vm185_vm9 = vcmp.eq.s32.totalorder %v137_v24, 64  ;;  %vm201_vm11 = vcmp.eq.s32.totalorder %v137_v24, 96 }
  0x11   :  { %vm234_vm7 = vmor %vm218_vm4, %vm186_vm2  ;;  %vm152_vm13 = vcmp.eq.s32.totalorder %v136_v25, 0  ;;  %vm168_vm14 = vcmp.eq.s32.totalorder %v136_v25, 32  ;;  %vm184_vm0 = vcmp.eq.s32.totalorder %v136_v25, 64  ;;  %vm200_vm2 = vcmp.eq.s32.totalorder %v136_v25, 96 }
  0x12   :  { %429 = vmatpush.msra.mxu2 %v412_v8  ;;  %vm1097_vm10 = vmor %vm234_vm7, %vm202_vm3  ;;  %vm151_vm4 = vcmp.eq.s32.totalorder %v135_v29, 0  ;;  %vm183_vm7 = vcmp.eq.s32.totalorder %v135_v29, 64  ;;  %v1189_v54 = vadd.s32 56, %v1066_v16  ;;  %v1203_v58 = vadd.s32 48, %v1066_v16 }
  0x13   :  { %v825_v31 = vsel %vm1097_vm10, 1.0, %v986_v30  ;;  %vm217_vm12 = vmor %vm153_vm5, %vm169_vm6  ;;  %vm167_vm5 = vcmp.eq.s32.totalorder %v135_v29, 32  ;;  %v1217_v62 = vadd.s32 40, %v1066_v16  ;;  %v1231_v2 = vadd.s32 32, %v1066_v16 }
  0x14   :  { %430 = vmatpush.msra.mxu2 %v411_v9  ;;  %846 = vmatpush.xpose.msk.msra.mxu1 %vm1681_vm8, %v825_v31  ;;  %vm233_vm15 = vmor %vm217_vm12, %vm185_vm9  ;;  %v130_v57 = vsub.s32 %v1189_v54, %v1068_v17  ;;  %v129_v61 = vsub.s32 %v1203_v58, %v1068_v17  ;;  %v1720_v6 = vmov 0  ;;  %v1249_v7 = vadd.s32 24, %v1066_v16 }
  0x15   :  { %826 = vmatpush.xpose.msk.msra.mxu0 %vm1681_vm8, %v825_v31  ;;  %vm1114_vm1 = vmor %vm233_vm15, %vm201_vm11  ;;  %vm199_vm11 = vcmp.eq.s32.totalorder %v135_v29, 96  ;;  %v128_v1 = vsub.s32 %v1217_v62, %v1068_v17  ;;  %v127_v5 = vsub.s32 %v1231_v2, %v1068_v17  ;;  %v1726_v23 = vmov 0 }
  0x16   :  { %431 = vmatpush.msra.mxu2 %v410_v10  ;;  %v1701_v34 = vsel %vm1114_vm1, 4294967295, %v1700_v34  ;;  %v824_v36 = vsel %vm1114_vm1, 1.0, %v986_v30  ;;  %vm216_vm3 = vmor %vm152_vm13, %vm168_vm14  ;;  %vm150_vm13 = vcmp.eq.s32.totalorder %v134_v35, 0  ;;  %vm166_vm14 = vcmp.eq.s32.totalorder %v134_v35, 32 }
  0x17   :  { %vm232_vm6 = vmor %vm216_vm3, %vm184_vm0  ;;  %vm165_vm1 = vcmp.eq.s32.totalorder %v133_v38, 32  ;;  %v126_v9 = vsub.s32 %v1249_v7, %v1068_v17  ;;  %v1722_v10 = vmov 0  ;;  %v123_v25 = vsub.s32 %v1066_v16, %v1068_v17 }
  0x18   :  { %432 = vmatpush.msra.mxu2 %v409_v11  ;;  %847 = vmatpush.xpose.msk.msra.mxu1 %vm1681_vm8, %v824_v36  ;;  %vm1124_vm9 = vmor %vm232_vm6, %vm200_vm2  ;;  %vm182_vm2 = vcmp.eq.s32.totalorder %v134_v35, 64  ;;  %vm149_vm6 = vcmp.eq.s32.totalorder %v133_v38, 0  ;;  %v1263_v11 = vadd.s32 16, %v1066_v16  ;;  %v1728_v29 = vmov 0  ;;  %v377_v35 = vld [vmem:[%s1675_s4] sm:$0x1] }
  0x19   :  { %827 = vmatpush.xpose.msk.msra.mxu0 %vm1681_vm8, %v824_v36  ;;  %v823_v40 = vsel %vm1124_vm9, 1.0, %v986_v30  ;;  %vm215_vm12 = vmor %vm151_vm4, %vm167_vm5  ;;  %vm181_vm5 = vcmp.eq.s32.totalorder %v133_v38, 64 }
  0x1a   :  { %433 = vmatpush.msra.mxu2 %v408_v12  ;;  %vm231_vm15 = vmor %vm215_vm12, %vm183_vm7  ;;  %vm164_vm12 = vcmp.eq.s32.totalorder %v132_v43, 32 }
  0x1b   :  { %vm1137_vm0 = vmor %vm231_vm15, %vm199_vm11  ;;  %vm148_vm11 = vcmp.eq.s32.totalorder %v132_v43, 0 }
  0x1c   :  { %434 = vmatpush.msra.mxu2 %v407_v13  ;;  %848 = vmatpush.xpose.msk.msra.mxu1 %vm1681_vm8, %v823_v40  ;;  %vm214_vm3 = vmor %vm150_vm13, %vm166_vm14  ;;  %v822_v44 = vsel %vm1137_vm0, 1.0, %v986_v30  ;;  %vm180_vm14 = vcmp.eq.s32.totalorder %v132_v43, 64  ;;  %v125_v13 = vsub.s32 %v1263_v11, %v1068_v17  ;;  %v450_v43 = vld [vmem:[%s1673_s2] sm:$0xff] }
  0x1d   :  { %828 = vmatpush.xpose.msk.msra.mxu0 %vm1681_vm8, %v823_v40  ;;  %vm1151_vm4 = vmor %vm214_vm3, %vm182_vm2  ;;  %vm147_vm2 = vcmp.eq.s32.totalorder %v131_v53, 0  ;;  %vm163_vm3 = vcmp.eq.s32.totalorder %v131_v53, 32 }
  0x1e   :  { %435 = vmatpush.msra.mxu2 %v406_v15  ;;  %vm213_vm7 = vmor %vm149_vm6, %vm165_vm1  ;;  %v821_v46 = vsel %vm1151_vm4, 1.0, %v986_v30  ;;  %vm179_vm6 = vcmp.eq.s32.totalorder %v131_v53, 64  ;;  %v1277_v15 = vadd.s32 8, %v1066_v16  ;;  %v453_v53 = vld [vmem:[%s1673_s2 + $0x18] sm:$0xff] }
  0x1f   :  { %vm1160_vm13 = vmor %vm213_vm7, %vm181_vm5 }
  0x20   :  { %436 = vmatpush.msra.mxu2 %v405_v18  ;;  %849 = vmatpush.xpose.msk.msra.mxu1 %vm1681_vm8, %v822_v44  ;;  %vm212_vm15 = vmor %vm148_vm11, %vm164_vm12  ;;  %v820_v49 = vsel %vm1160_vm13, 1.0, %v986_v30  ;;  %vm146_vm11 = vcmp.eq.s32.totalorder %v130_v57, 0  ;;  %vm162_vm12 = vcmp.eq.s32.totalorder %v130_v57, 32  ;;  %v1344_v57 = vmul.u32 32, %v1068_v17 }
  0x21   :  { %437 = vmatmul.f32.vlgmr.msra.gmra.mxu2 %v401_v22  ;;  %829 = vmatpush.xpose.msk.msra.mxu0 %vm1681_vm8, %v822_v44  ;;  %vm1172_vm1 = vmor %vm212_vm15, %vm180_vm14  ;;  %vm145_vm15 = vcmp.eq.s32.totalorder %v129_v61, 0  ;;  %v124_v22 = vsub.s32 %v1277_v15, %v1068_v17  ;;  %v284_v44 = vld [vmem:[%s1672_s1 + $0x8] sm:$0xff] }
  0x22   :  { %v819_v51 = vsel %vm1172_vm1, 1.0, %v986_v30  ;;  %vm211_vm5 = vmor %vm147_vm2, %vm163_vm3  ;;  %vm161_vm2 = vcmp.eq.s32.totalorder %v129_v61, 32  ;;  %v1730_v61 = vmov 0 }
  0x23   :  { %vm1191_vm7 = vmor %vm211_vm5, %vm179_vm6  ;;  %vm144_vm6 = vcmp.eq.s32.totalorder %v128_v1, 0  ;;  %vm160_vm5 = vcmp.eq.s32.totalorder %v128_v1, 32 }
  0x24   :  { %850 = vmatpush.xpose.msk.msra.mxu1 %vm1681_vm8, %v821_v46  ;;  %v818_v56 = vsel %vm1191_vm7, 1.0, %v986_v30  ;;  %vm1205_vm14 = vmor %vm146_vm11, %vm162_vm12  ;;  %vm143_vm12 = vcmp.eq.s32.totalorder %v127_v5, 0 }
  0x25   :  { %830 = vmatpush.xpose.msk.msra.mxu0 %vm1681_vm8, %v821_v46  ;;  %v817_v60 = vsel %vm1205_vm14, 1.0, %v986_v30  ;;  %vm1219_vm3 = vmor %vm145_vm15, %vm161_vm2  ;;  %vm159_vm15 = vcmp.eq.s32.totalorder %v127_v5, 32  ;;  %v451_v46 = vld [vmem:[%s1673_s2 + $0x8] sm:$0xff] }
  0x26   :  { %v816_v0 = vsel %vm1219_vm3, 1.0, %v986_v30  ;;  %vm1233_vm11 = vmor %vm144_vm6, %vm160_vm5  ;;  %vm1258_vm6 = vcmp.eq.s32.totalorder %v126_v9, 0  ;;  %vm1272_vm5 = vcmp.eq.s32.totalorder %v125_v13, 0 }
  0x27   :  { %v815_v4 = vsel %vm1233_vm11, 1.0, %v986_v30  ;;  %vm1244_vm2 = vmor %vm143_vm12, %vm159_vm15  ;;  %v1723_v10 = vsel %vm1258_vm6, 4294967295, %v1722_v10  ;;  %v813_v12 = vsel %vm1258_vm6, 1.0, %v986_v30  ;;  %v1725_v14 = vsel %vm1272_vm5, 4294967295, %v1724_v14 }
  0x28   :  { %851 = vmatpush.xpose.msk.msra.mxu1 %vm1681_vm8, %v820_v49  ;;  %v1721_v6 = vsel %vm1244_vm2, 4294967295, %v1720_v6  ;;  %v814_v8 = vsel %vm1244_vm2, 1.0, %v986_v30  ;;  %v812_v18 = vsel %vm1272_vm5, 1.0, %v986_v30  ;;  %vm1286_vm12 = vcmp.eq.s32.totalorder %v124_v22, 0 }
  0x29   :  { %440 = vmatmul.f32.gmra.mxu2 %v402_v32  ;;  %831 = vmatpush.xpose.msk.msra.mxu0 %vm1681_vm8, %v820_v49  ;;  %v1727_v23 = vsel %vm1286_vm12, 4294967295, %v1726_v23  ;;  %v811_v24 = vsel %vm1286_vm12, 1.0, %v986_v30  ;;  %vm1297_vm15 = vcmp.eq.s32.totalorder %v123_v25, 0  ;;  %v452_v49 = vld [vmem:[%s1673_s2 + $0x10] sm:$0xff] }
  0x2a   :  { %v1729_v29 = vsel %vm1297_vm15, 4294967295, %v1728_v29  ;;  %v810_v32 = vsel %vm1297_vm15, 1.0, %v986_v30  ;;  %vm56_vm15 = vcmp.ge.s32.totalorder %v1074_v19, %v1344_v57 }
  0x2c   :  { %852 = vmatpush.xpose.msk.msra.mxu1 %vm1681_vm8, %v819_v51 }
  0x2d   :  { %832 = vmatpush.xpose.msk.msra.mxu0 %vm1681_vm8, %v819_v51  ;;  %v286_v51 = vld [vmem:[%s1672_s1 + $0x18] sm:$0xff] }
  0x30   :  { %853 = vmatpush.xpose.msk.msra.mxu1 %vm1681_vm8, %v818_v56 }
  0x31   :  { %443 = vmatmul.f32.gmra.mxu2 %v403_v42  ;;  %833 = vmatpush.xpose.msk.msra.mxu0 %vm1681_vm8, %v818_v56  ;;  %v283_v42 = vld [vmem:[%s1672_s1] sm:$0xff]  ;;  %v57_v56 = vadd.s32 1, %v1068_v17  ;;  %v1732_v17 = vmov 0 }
  0x34   :  { %854 = vmatpush.xpose.msk.msra.mxu1 %vm1681_vm8, %v817_v60 }
  0x35   :  { %834 = vmatpush.xpose.msk.msra.mxu0 %vm1681_vm8, %v817_v60  ;;  %v1346_v60 = vmul.u32 32, %v57_v56 }
  0x37   :  { %vm74_vm12 = vcmp.lt.s32.totalorder %v1074_v19, %v1346_v60  ;;  %vm73_vm6 = vcmp.lt.s32.totalorder %v1077_v20, %v1346_v60  ;;  %v1734_v19 = vmov 0 }
  0x38   :  { %855 = vmatpush.xpose.msk.msra.mxu1 %vm1681_vm8, %v816_v0  ;;  %vm1352_vm5 = vmand %vm56_vm15, %vm74_vm12  ;;  %vm54_vm12 = vcmp.ge.s32.totalorder %v1080_v21, %v1344_v57  ;;  %vm72_vm15 = vcmp.lt.s32.totalorder %v1080_v21, %v1346_v60  ;;  %v1738_v21 = vmov 0 }
  0x39   :  { %446 = vmatmul.f32.gmra.mxu2 %v404_v48  ;;  %835 = vmatpush.xpose.msk.msra.mxu0 %vm1681_vm8, %v816_v0  ;;  %v285_v48 = vld [vmem:[%s1672_s1 + $0x10] sm:$0xff]  ;;  %v1731_v61 = vsel %vm1352_vm5, 4294967295, %v1730_v61  ;;  %v987_v0 = vmov 1.0   ;;  %s988_s1 = smov [#allocation2]  }
  0x3a   :  { %s780_s2 = sshll.u32 %s988_s1, 4  ;;  %s781_s2 = int_to_ptr.vmem [resolvable:$true] %s780_s2 }
  0x3c   :  { %856 = vmatpush.xpose.msk.msra.mxu1 %vm1681_vm8, %v815_v4 }
  0x3d   :  { %836 = vmatpush.xpose.msk.msra.mxu0 %vm1681_vm8, %v815_v4 }
  0x40   :  { %857 = vmatpush.xpose.msk.msra.mxu1 %vm1681_vm8, %v814_v8 }
  0x41   :  { %837 = vmatpush.xpose.msk.msra.mxu0 %vm1681_vm8, %v814_v8 }
  0x44   :  { %858 = vmatpush.xpose.msk.msra.mxu1 %vm1681_vm8, %v813_v12 }
  0x45   :  { %838 = vmatpush.xpose.msk.msra.mxu0 %vm1681_vm8, %v813_v12 }
  0x48   :  { %859 = vmatpush.xpose.msk.msra.mxu1 %vm1681_vm8, %v812_v18 }
  0x49   :  { %839 = vmatpush.xpose.msk.msra.mxu0 %vm1681_vm8, %v812_v18 }
  0x4c   :  { %860 = vmatpush.xpose.msk.msra.mxu1 %vm1681_vm8, %v811_v24 }
  0x4d   :  { %840 = vmatpush.xpose.msk.msra.mxu0 %vm1681_vm8, %v811_v24 }
  0x50   :  { %861 = vmatpush.xpose.msk.msra.mxu1 %vm1681_vm8, %v810_v32 }
  0x51   :  { %841 = vmatpush.xpose.msk.msra.mxu0 %vm1681_vm8, %v810_v32 }
  0x53   :  { %862 = vmatmul.msk.f32.vlgmr.msra.gmra.mxu1 %vm1681_vm8, %v377_v35 }
  0x54   :  { %842 = vmatmul.msk.f32.vlgmr.msra.gmra.mxu0 %vm1681_vm8, %v283_v42 }
  0x5c   :  { %843 = vmatmul.msk.f32.gmra.mxu0 %vm1681_vm8, %v284_v44 }
  0x64   :  { %844 = vmatmul.msk.f32.gmra.mxu0 %vm1681_vm8, %v285_v48 }
  0x6c   :  { %845 = vmatmul.msk.f32.gmra.mxu0 %vm1681_vm8, %v286_v51 }
  0xa4   :  { %v438_v31 = vpop.f32.mrf.mxu2 }
  0xac   :  { %v441_v36 = vpop.f32.mrf.mxu2 }
  0xb4   :  { %v444_v38 = vpop.f32.mrf.mxu2 }
  0xbc   :  { %v447_v40 = vpop.f32.mrf.mxu2 }
  0xbd   :  { %479 = vmatpush.msra.mxu3 %v447_v40 }
  0xbf   :  { %480 = vmatpush.msra.mxu3 %v444_v38 }
  0xc1   :  { %481 = vmatpush.msra.mxu3 %v441_v36 }
  0xc3   :  { %482 = vmatpush.msra.mxu3 %v438_v31 }
  0xc4   :  { %863 = vmatmul.msk.f32.vlgmr.msra.gmra.mxu3 %vm1681_vm8, %v450_v43 }
  0xc5   :  { %871 = vmatpush.msk.msrb.mxu3 %vm1352_vm5, %v987_v0  ;;  %vm1374_vm5 = vmand %vm54_vm12, %vm72_vm15  ;;  %vm52_vm12 = vcmp.ge.s32.totalorder %v1095_v27, %v1344_v57  ;;  %vm70_vm15 = vcmp.lt.s32.totalorder %v1095_v27, %v1346_v60  ;;  %v1742_v27 = vmov 0 }
  0xc6   :  { %v1735_v19 = vsel %vm1374_vm5, 4294967295, %v1734_v19 }
  0xcc   :  { %864 = vmatmul.msk.f32.gmra.mxu3 %vm1681_vm8, %v451_v46 }
  0xd0   :  { %v398_v1 = vpop.f32.mrf.mxu1 }
  0xd1   :  { %v454_v4 = vperm.slane %v398_v1, 0  ;;  %v365_v55 = vpop.f32.mrf.mxu0 }
  0xd4   :  { %865 = vmatmul.msk.f32.gmra.mxu3 %vm1681_vm8, %v452_v49 }
  0xdc   :  { %866 = vmatmul.msk.f32.gmra.mxu3 %vm1681_vm8, %v453_v53  ;;  %vm55_vm8 = vcmp.ge.s32.totalorder %v1077_v20, %v1344_v57  ;;  %v1736_v20 = vmov 0 }
  0xdd   :  { %vm1363_vm2 = vmand %vm55_vm8, %vm73_vm6  ;;  %vm53_vm8 = vcmp.ge.s32.totalorder %v1092_v26, %v1344_v57  ;;  %vm71_vm6 = vcmp.lt.s32.totalorder %v1092_v26, %v1346_v60  ;;  %v1740_v26 = vmov 0 }
  0xde   :  { %v1733_v17 = vsel %vm1363_vm2, 4294967295, %v1732_v17  ;;  %872 = vmatpush.msk.msrb.mxu3 %vm1363_vm2, %v987_v0  ;;  %vm1385_vm2 = vmand %vm53_vm8, %vm71_vm6  ;;  %vm51_vm8 = vcmp.ge.s32.totalorder %v1111_v33, %v1344_v57  ;;  %vm69_vm6 = vcmp.lt.s32.totalorder %v1111_v33, %v1346_v60  ;;  %v1744_v33 = vmov 0 }
  0xdf   :  { %v1737_v20 = vsel %vm1385_vm2, 4294967295, %v1736_v20 }
  0xe0   :  { %873 = vmatpush.msk.msrb.mxu3 %vm1374_vm5, %v987_v0  ;;  %vm1396_vm5 = vmand %vm52_vm12, %vm70_vm15  ;;  %vm50_vm12 = vcmp.ge.s32.totalorder %v1131_v39, %v1344_v57  ;;  %vm68_vm15 = vcmp.lt.s32.totalorder %v1131_v39, %v1346_v60  ;;  %v1746_v39 = vmov 0 }
  0xe1   :  { %v1739_v21 = vsel %vm1396_vm5, 4294967295, %v1738_v21 }
  0xe2   :  { %874 = vmatpush.msk.msrb.mxu3 %vm1385_vm2, %v987_v0  ;;  %vm1407_vm2 = vmand %vm51_vm8, %vm69_vm6  ;;  %vm49_vm8 = vcmp.ge.s32.totalorder %v1184_v52, %v1344_v57  ;;  %vm67_vm6 = vcmp.lt.s32.totalorder %v1184_v52, %v1346_v60  ;;  %v1748_v52 = vmov 0 }
  0xe3   :  { %v1741_v26 = vsel %vm1407_vm2, 4294967295, %v1740_v26 }
  0xe4   :  { %875 = vmatpush.msk.msrb.mxu3 %vm1396_vm5, %v987_v0  ;;  %vm1418_vm5 = vmand %vm50_vm12, %vm68_vm15  ;;  %vm48_vm12 = vcmp.ge.s32.totalorder %v1189_v54, %v1344_v57  ;;  %vm66_vm15 = vcmp.lt.s32.totalorder %v1189_v54, %v1346_v60  ;;  %v1750_v54 = vmov 0 }
  0xe5   :  { %v1743_v27 = vsel %vm1418_vm5, 4294967295, %v1742_v27 }
  0xe6   :  { %876 = vmatpush.msk.msrb.mxu3 %vm1407_vm2, %v987_v0  ;;  %vm1429_vm2 = vmand %vm49_vm8, %vm67_vm6  ;;  %vm47_vm8 = vcmp.ge.s32.totalorder %v1203_v58, %v1344_v57  ;;  %vm65_vm6 = vcmp.lt.s32.totalorder %v1203_v58, %v1346_v60  ;;  %v1752_v58 = vmov 0 }
  0xe7   :  { %v1745_v33 = vsel %vm1429_vm2, 4294967295, %v1744_v33 }
  0xe8   :  { %877 = vmatpush.msk.msrb.mxu3 %vm1418_vm5, %v987_v0  ;;  %vm1440_vm5 = vmand %vm48_vm12, %vm66_vm15  ;;  %vm46_vm12 = vcmp.ge.s32.totalorder %v1217_v62, %v1344_v57  ;;  %vm64_vm15 = vcmp.lt.s32.totalorder %v1217_v62, %v1346_v60  ;;  %v1754_v62 = vmov 0 }
  0xe9   :  { %v1747_v39 = vsel %vm1440_vm5, 4294967295, %v1746_v39 }
  0xea   :  { %878 = vmatpush.msk.msrb.mxu3 %vm1429_vm2, %v987_v0  ;;  %vm1451_vm2 = vmand %vm47_vm8, %vm65_vm6  ;;  %vm45_vm8 = vcmp.ge.s32.totalorder %v1231_v2, %v1344_v57  ;;  %vm63_vm6 = vcmp.lt.s32.totalorder %v1231_v2, %v1346_v60  ;;  %v1756_v2 = vmov 0 }
  0xeb   :  { %v1749_v52 = vsel %vm1451_vm2, 4294967295, %v1748_v52 }
  0xec   :  { %879 = vmatpush.msk.msrb.mxu3 %vm1440_vm5, %v987_v0  ;;  %vm1462_vm5 = vmand %vm46_vm12, %vm64_vm15  ;;  %vm44_vm12 = vcmp.ge.s32.totalorder %v1249_v7, %v1344_v57  ;;  %vm62_vm15 = vcmp.lt.s32.totalorder %v1249_v7, %v1346_v60 }
  0xed   :  { %v1751_v54 = vsel %vm1462_vm5, 4294967295, %v1750_v54 }
  0xee   :  { %880 = vmatpush.msk.msrb.mxu3 %vm1451_vm2, %v987_v0  ;;  %vm1473_vm2 = vmand %vm45_vm8, %vm63_vm6  ;;  %vm43_vm8 = vcmp.ge.s32.totalorder %v1263_v11, %v1344_v57  ;;  %vm61_vm6 = vcmp.lt.s32.totalorder %v1263_v11, %v1346_v60 }
  0xef   :  { %v1753_v58 = vsel %vm1473_vm2, 4294967295, %v1752_v58 }
  0xf0   :  { %881 = vmatpush.msk.msrb.mxu3 %vm1462_vm5, %v987_v0  ;;  %vm1484_vm5 = vmand %vm44_vm12, %vm62_vm15  ;;  %vm42_vm12 = vcmp.ge.s32.totalorder %v1277_v15, %v1344_v57  ;;  %vm60_vm15 = vcmp.lt.s32.totalorder %v1277_v15, %v1346_v60 }
  0xf1   :  { %v1755_v62 = vsel %vm1484_vm5, 4294967295, %v1754_v62 }
  0xf2   :  { %882 = vmatpush.msk.msrb.mxu3 %vm1473_vm2, %v987_v0  ;;  %vm1495_vm2 = vmand %vm43_vm8, %vm61_vm6  ;;  %vm41_vm8 = vcmp.ge.s32.totalorder %v1066_v16, %v1344_v57  ;;  %vm59_vm6 = vcmp.lt.s32.totalorder %v1066_v16, %v1346_v60 }
  0xf3   :  { %v1757_v2 = vsel %vm1495_vm2, 4294967295, %v1756_v2 }
  0xf4   :  { %883 = vmatpush.msk.msrb.mxu3 %vm1484_vm5, %v987_v0  ;;  %vm1506_vm5 = vmand %vm42_vm12, %vm60_vm15  ;;  %vm1762_vm12 = vnez %v1701_v34 }
  0xf6   :  { %884 = vmatpush.msk.msrb.mxu3 %vm1495_vm2, %v987_v0  ;;  %vm1517_vm2 = vmand %vm41_vm8, %vm59_vm6 }
  0xf8   :  { %885 = vmatpush.msk.msrb.mxu3 %vm1506_vm5, %v987_v0 }
  0xfa   :  { %886 = vmatpush.msk.msrb.mxu3 %vm1517_vm2, %v987_v0 }
  0xfc   :  { %907 = vmatpush.msk.msra.mxu3 %vm1097_vm10, %v987_v0  ;;  %vm1763_vm10 = vnez %v1721_v6 }
  0xfe   :  { %908 = vmatpush.msk.msra.mxu3 %vm1762_vm12, %v987_v0 }
 0x100   :  { %909 = vmatpush.msk.msra.mxu3 %vm1124_vm9, %v987_v0 }
 0x102   :  { %910 = vmatpush.msk.msra.mxu3 %vm1137_vm0, %v987_v0  ;;  %vm1764_vm0 = vnez %v1723_v10 }
 0x104   :  { %911 = vmatpush.msk.msra.mxu3 %vm1151_vm4, %v987_v0 }
 0x106   :  { %912 = vmatpush.msk.msra.mxu3 %vm1160_vm13, %v987_v0  ;;  %vm1765_vm13 = vnez %v1725_v14  ;;  %v368_v14 = vpop.f32.mrf.mxu0 }
 0x108   :  { %913 = vmatpush.msk.msra.mxu3 %vm1172_vm1, %v987_v0 }
 0x10a   :  { %914 = vmatpush.msk.msra.mxu3 %vm1191_vm7, %v987_v0 }
 0x10c   :  { %915 = vmatpush.msk.msra.mxu3 %vm1205_vm14, %v987_v0  ;;  %vm1766_vm14 = vnez %v1727_v23 }
 0x10e   :  { %916 = vmatpush.msk.msra.mxu3 %vm1219_vm3, %v987_v0  ;;  %vm1767_vm3 = vnez %v1729_v29 }
 0x110   :  { %917 = vmatpush.msk.msra.mxu3 %vm1233_vm11, %v987_v0 }
 0x112   :  { %918 = vmatpush.msk.msra.mxu3 %vm1763_vm10, %v987_v0 }
 0x114   :  { %919 = vmatpush.msk.msra.mxu3 %vm1764_vm0, %v987_v0 }
 0x116   :  { %920 = vmatpush.msk.msra.mxu3 %vm1765_vm13, %v987_v0 }
 0x118   :  { %921 = vmatpush.msk.msra.mxu3 %vm1766_vm14, %v987_v0  ;;  %vm605_vm14 = vcmask 31744  }
 0x11a   :  { %922 = vmatpush.msk.msra.mxu3 %vm1767_vm3, %v987_v0  ;;  %vm1768_vm3 = vnez %v1731_v61 }
 0x147   :  { %v484_v8 = vpop.f32.mrf.mxu3 }
 0x148   :  { %v485_v9 = vadd.f32 %v484_v8, %v454_v4 }
 0x14a   :  { %v867_v11 = vmul.f32 -1.442695, %v485_v9 }
 0x14c   :  { %928 = vpow2.f32 %v867_v11 }
 0x14f   :  { %v487_v16 = vpop.f32.mrf.mxu3 }
 0x150   :  { %v488_v12 = vadd.f32 %v487_v16, %v454_v4  ;;  %v371_v16 = vpop.f32.mrf.mxu0 }
 0x152   :  { %v929_v28 = vpop.eup %928  ;;  %v868_v13 = vmul.f32 -1.442695, %v488_v12 }
 0x153   :  { %v508_v34 = vadd.f32 1.0, %v929_v28 }
 0x154   :  { %930 = vpow2.f32 %v868_v13 }
 0x155   :  { %932 = vrcp.f32 %v508_v34  ;;  %v523_v24 = vand.u32 2147483648, %v508_v34  ;;  %v521_v31 = vand.u32 2147483647, %v508_v34  ;;  %vm517_vm4 = vweird.f32 %v508_v34 }
 0x157   :  { %v490_v37 = vpop.f32.mrf.mxu3  ;;  %v524_v38 = vor.u32 1.1754944e-38, %v523_v24  ;;  %vm522_vm7 = vcmp.eq.f32.partialorder %v521_v31, 8.507059e+37 }
 0x158   :  { %v491_v41 = vadd.f32 %v490_v37, %v454_v4 }
 0x15a   :  { %v931_v45 = vpop.eup %930  ;;  %v869_v47 = vmul.f32 -1.442695, %v491_v41 }
 0x15b   :  { %v933_v15 = vpop.eup %932  ;;  %v509_v50 = vadd.f32 1.0, %v931_v45 }
 0x15c   :  { %934 = vpow2.f32 %v869_v47  ;;  %v513_v18 = vmul.f32 %v933_v15, %v508_v34  ;;  %vm518_vm9 = vweird.f32 %v933_v15 }
 0x15d   :  { %936 = vrcp.f32 %v509_v50  ;;  %vm519_vm1 = vmor %vm517_vm4, %vm518_vm9  ;;  %v538_v46 = vand.u32 2147483648, %v509_v50  ;;  %v536_v49 = vand.u32 2147483647, %v509_v50  ;;  %vm532_vm15 = vweird.f32 %v509_v50 }
 0x15e   :  { %v514_v22 = vsub.f32 1.0, %v513_v18 }
 0x15f   :  { %v493_v59 = vpop.f32.mrf.mxu3  ;;  %v539_v57 = vor.u32 1.1754944e-38, %v538_v46  ;;  %vm537_vm6 = vcmp.eq.f32.partialorder %v536_v49, 8.507059e+37 }
 0x160   :  { %v494_v25 = vadd.f32 %v493_v59, %v454_v4  ;;  %v515_v63 = vmul.f32 %v933_v15, %v514_v22  ;;  %v374_v22 = vpop.f32.mrf.mxu0 }
 0x162   :  { %v935_v32 = vpop.eup %934  ;;  %v870_v3 = vmul.f32 -1.442695, %v494_v25  ;;  %v516_v35 = vadd.f32 %v933_v15, %v515_v63 }
 0x163   :  { %v937_v6 = vpop.eup %936  ;;  %v510_v36 = vadd.f32 1.0, %v935_v32 }
 0x164   :  { %938 = vpow2.f32 %v870_v3  ;;  %v520_v40 = vsel %vm519_vm1, %v933_v15, %v516_v35  ;;  %v528_v42 = vmul.f32 %v937_v6, %v509_v50  ;;  %vm533_vm11 = vweird.f32 %v937_v6 }
 0x165   :  { %940 = vrcp.f32 %v510_v36  ;;  %v1569_v10 = vsel %vm522_vm7, %v524_v38, %v520_v40  ;;  %vm534_vm8 = vmor %vm532_vm15, %vm533_vm11  ;;  %v553_v8 = vand.u32 2147483648, %v510_v36  ;;  %v551_v11 = vand.u32 2147483647, %v510_v36 }
 0x166   :  { %v572_v43 = vmul.f32 %v1569_v10, %v365_v55  ;;  %v529_v44 = vsub.f32 1.0, %v528_v42  ;;  %vm547_vm10 = vweird.f32 %v510_v36  ;;  %vm1769_vm11 = vnez %v1733_v17 }
 0x167   :  { %v554_v13 = vor.u32 1.1754944e-38, %v553_v8  ;;  %vm552_vm0 = vcmp.eq.f32.partialorder %v551_v11, 8.507059e+37  ;;  %v808_v46 = vsel %vm1769_vm11, 1.0, %v986_v30  ;;  %vm1770_vm15 = vnez %v1735_v19 }
 0x168   :  { %592 = vmatmul.f32.vlgmr.msrb.gmra.mxu3 %v572_v43  ;;  %v530_v48 = vmul.f32 %v937_v6, %v529_v44 }
 0x16a   :  { %v939_v51 = vpop.eup %938  ;;  %v531_v53 = vadd.f32 %v937_v6, %v530_v48 }
 0x16b   :  { %v941_v23 = vpop.eup %940  ;;  %v511_v56 = vadd.f32 1.0, %v939_v51 }
 0x16c   :  { %v535_v60 = vsel %vm534_vm8, %v937_v6, %v531_v53  ;;  %v543_v1 = vmul.f32 %v941_v23, %v510_v36  ;;  %vm548_vm12 = vweird.f32 %v941_v23  ;;  %vm1771_vm8 = vnez %v1737_v20 }
 0x16d   :  { %942 = vrcp.f32 %v511_v56  ;;  %v1575_v4 = vsel %vm537_vm6, %v539_v57, %v535_v60  ;;  %vm549_vm9 = vmor %vm547_vm10, %vm548_vm12  ;;  %v568_v15 = vand.u32 2147483648, %v511_v56  ;;  %v566_v18 = vand.u32 2147483647, %v511_v56 }
 0x16e   :  { %v573_v29 = vmul.f32 %v1575_v4, %v368_v14  ;;  %v544_v0 = vsub.f32 1.0, %v543_v1  ;;  %vm562_vm13 = vweird.f32 %v511_v56  ;;  %v809_v14 = vsel %vm1768_vm3, 1.0, %v986_v30 }
 0x16f   :  { %v569_v59 = vor.u32 1.1754944e-38, %v568_v15  ;;  %vm567_vm7 = vcmp.eq.f32.partialorder %v566_v18, 8.507059e+37  ;;  %887 = vmatpush.xpose.msk.msrb.mxu2 %vm605_vm14, %v809_v14  ;;  %v806_v61 = vsel %vm1771_vm8, 1.0, %v986_v30  ;;  %vm1772_vm6 = vnez %v1739_v21 }
 0x170   :  { %595 = vmatmul.f32.gmra.mxu3 %v573_v29  ;;  %v545_v9 = vmul.f32 %v941_v23, %v544_v0  ;;  %v805_v19 = vsel %vm1772_vm6, 1.0, %v986_v30  ;;  %vm1773_vm12 = vnez %v1741_v26  ;;  %vm1774_vm10 = vnez %v1743_v27 }
 0x171   :  { %v804_v20 = vsel %vm1773_vm12, 1.0, %v986_v30  ;;  %v803_v21 = vsel %vm1774_vm10, 1.0, %v986_v30  ;;  %vm1781_vm3 = vnez %v1757_v2 }
 0x172   :  { %v546_v12 = vadd.f32 %v941_v23, %v545_v9 }
 0x173   :  { %v943_v28 = vpop.eup %942  ;;  %888 = vmatpush.xpose.msk.msrb.mxu2 %vm605_vm14, %v808_v46 }
 0x174   :  { %v550_v34 = vsel %vm549_vm9, %v941_v23, %v546_v12  ;;  %v558_v37 = vmul.f32 %v943_v28, %v511_v56  ;;  %vm563_vm4 = vweird.f32 %v943_v28  ;;  %v807_v23 = vsel %vm1770_vm15, 1.0, %v986_v30 }
 0x175   :  { %v1578_v41 = vsel %vm552_vm0, %v554_v13, %v550_v34  ;;  %vm564_vm1 = vmor %vm562_vm13, %vm563_vm4  ;;  %vm1775_vm9 = vnez %v1745_v33  ;;  %vm1776_vm0 = vnez %v1747_v39  ;;  %vm1777_vm4 = vnez %v1749_v52 }
 0x176   :  { %v574_v45 = vmul.f32 %v1578_v41, %v371_v16  ;;  %v559_v47 = vsub.f32 1.0, %v558_v37  ;;  %v802_v26 = vsel %vm1775_vm9, 1.0, %v986_v30  ;;  %v800_v13 = vsel %vm1777_vm4, 1.0, %v986_v30 }
 0x177   :  { %889 = vmatpush.xpose.msk.msrb.mxu2 %vm605_vm14, %v807_v23  ;;  %vm1778_vm13 = vnez %v1751_v54  ;;  %v796_v52 = vsel %vm1781_vm3, 1.0, %v986_v30  ;;  %v795_v54 = vsel %vm1506_vm5, 1.0, %v986_v30 }
 0x178   :  { %598 = vmatmul.f32.gmra.mxu3 %v574_v45  ;;  %v560_v50 = vmul.f32 %v943_v28, %v559_v47  ;;  %v799_v33 = vsel %vm1778_vm13, 1.0, %v986_v30 }
 0x17a   :  { %v561_v55 = vadd.f32 %v943_v28, %v560_v50 }
 0x17b   :  { %890 = vmatpush.xpose.msk.msrb.mxu2 %vm605_vm14, %v806_v61 }
 0x17c   :  { %v565_v24 = vsel %vm564_vm1, %v943_v28, %v561_v55  ;;  %v801_v28 = vsel %vm1776_vm0, 1.0, %v986_v30  ;;  %vm1779_vm1 = vnez %v1753_v58  ;;  %v794_v58 = vsel %vm1517_vm2, 1.0, %v986_v30 }
 0x17d   :  { %v1581_v25 = vsel %vm567_vm7, %v569_v59, %v565_v24  ;;  %v798_v39 = vsel %vm1779_vm1, 1.0, %v986_v30  ;;  %vm1780_vm7 = vnez %v1755_v62  ;;  %vm1782_vm2 = vcmask 261120  }
 0x17e   :  { %v575_v63 = vmul.f32 %v1581_v25, %v374_v22  ;;  %v797_v34 = vsel %vm1780_vm7, 1.0, %v986_v30  ;;  %vm1783_vm5 = vmmov %vm1782_vm2 }
 0x17f   :  { %891 = vmatpush.xpose.msk.msrb.mxu2 %vm605_vm14, %v805_v19  ;;  %vm1785_vm11 = vmmov %vm1782_vm2 }
 0x180   :  { %601 = vmatmul.f32.gmra.mxu3 %v575_v63 }
 0x183   :  { %892 = vmatpush.xpose.msk.msrb.mxu2 %vm605_vm14, %v804_v20 }
 0x187   :  { %893 = vmatpush.xpose.msk.msrb.mxu2 %vm605_vm14, %v803_v21 }
 0x18b   :  { %894 = vmatpush.xpose.msk.msrb.mxu2 %vm605_vm14, %v802_v26 }
 0x18f   :  { %895 = vmatpush.xpose.msk.msrb.mxu2 %vm605_vm14, %v801_v28 }
 0x193   :  { %896 = vmatpush.xpose.msk.msrb.mxu2 %vm605_vm14, %v800_v13 }
 0x197   :  { %897 = vmatpush.xpose.msk.msrb.mxu2 %vm605_vm14, %v799_v33 }
 0x19b   :  { %898 = vmatpush.xpose.msk.msrb.mxu2 %vm605_vm14, %v798_v39 }
 0x19f   :  { %899 = vmatpush.xpose.msk.msrb.mxu2 %vm605_vm14, %v797_v34 }
 0x1a3   :  { %900 = vmatpush.xpose.msk.msrb.mxu2 %vm605_vm14, %v796_v52 }
 0x1a7   :  { %901 = vmatpush.xpose.msk.msrb.mxu2 %vm605_vm14, %v795_v54 }
 0x1ab   :  { %902 = vmatpush.xpose.msk.msrb.mxu2 %vm605_vm14, %v794_v58 }
 0x1eb   :  { %v593_v31 = vpop.f32.mrf.mxu3 }
 0x1ec   :  { %v606_v32 = vsel %vm605_vm14, %v593_v31, -inf }
 0x1ed   :  { %607 = vmax.xlane.f32.xlu0 %v606_v32 }
 0x1f3   :  { %v596_v3 = vpop.f32.mrf.mxu3 }
 0x1f4   :  { %v609_v35 = vsel %vm605_vm14, %v596_v3, -inf }
 0x1f5   :  { %610 = vmax.xlane.f32.xlu0 %v609_v35 }
 0x1fb   :  { %v599_v6 = vpop.f32.mrf.mxu3 }
 0x1fc   :  { %v612_v36 = vsel %vm605_vm14, %v599_v6, -inf }
 0x1fd   :  { %613 = vmax.xlane.f32.xlu1 %v612_v36 }
 0x203   :  { %v602_v38 = vpop.f32.mrf.mxu3 }
 0x204   :  { %v615_v40 = vsel %vm605_vm14, %v602_v38, -inf }
 0x205   :  { %616 = vmax.xlane.f32.xlu1 %v615_v40 }
 0x260   :  { %v608_v42 = vpop.xlane.xlu0 %607 }
 0x261   :  { %v618_v43 = vsub.f32 %v593_v31, %v608_v42 }
 0x263   :  { %v622_v44 = vmul.f32 1.442695, %v618_v43 }
 0x265   :  { %944 = vpow2.f32 %v622_v44 }
 0x268   :  { %v611_v48 = vpop.xlane.xlu0 %610 }
 0x269   :  { %v619_v49 = vsub.f32 %v596_v3, %v611_v48 }
 0x26b   :  { %v945_v51 = vpop.eup %944  ;;  %v624_v53 = vmul.f32 1.442695, %v619_v49 }
 0x26c   :  { %v630_v56 = vsel %vm605_vm14, %v945_v51, 0.0 }
 0x26d   :  { %946 = vpow2.f32 %v624_v53  ;;  %631 = vadd.xlane.f32.xlu2 %v630_v56 }
 0x270   :  { %v614_v17 = vpop.xlane.xlu1 %613 }
 0x271   :  { %v620_v57 = vsub.f32 %v599_v6, %v614_v17 }
 0x273   :  { %v947_v60 = vpop.eup %946  ;;  %v626_v1 = vmul.f32 1.442695, %v620_v57 }
 0x274   :  { %v633_v29 = vsel %vm605_vm14, %v947_v60, 0.0 }
 0x275   :  { %948 = vpow2.f32 %v626_v1  ;;  %634 = vadd.xlane.f32.xlu2 %v633_v29 }
 0x278   :  { %v617_v0 = vpop.xlane.xlu1 %616 }
 0x279   :  { %v621_v8 = vsub.f32 %v602_v38, %v617_v0 }
 0x27b   :  { %v949_v9 = vpop.eup %948  ;;  %v628_v11 = vmul.f32 1.442695, %v621_v8 }
 0x27c   :  { %v636_v16 = vsel %vm605_vm14, %v949_v9, 0.0 }
 0x27d   :  { %950 = vpow2.f32 %v628_v11  ;;  %637 = vadd.xlane.f32.xlu0 %v636_v16 }
 0x283   :  { %v951_v12 = vpop.eup %950 }
 0x284   :  { %v639_v27 = vsel %vm605_vm14, %v951_v12, 0.0 }
 0x285   :  { %640 = vadd.xlane.f32.xlu1 %v639_v27 }
 0x2e0   :  { %v632_v62 = vpop.xlane.xlu2 %631 }
 0x2e1   :  { %952 = vrcp.f32 %v632_v62 }
 0x2e7   :  { %v953_v37 = vpop.eup %952 }
 0x2e8   :  { %v635_v45 = vpop.xlane.xlu2 %634  ;;  %v646_v2 = vmul.f32 %v953_v37, %v945_v51 }
 0x2e9   :  { %954 = vrcp.f32 %v635_v45 }
 0x2ea   :  { %903 = vmatmul.msk.f32.vlgmr.msrb.gmra.mxu2 %vm605_vm14, %v646_v2 }
 0x2ef   :  { %v955_v47 = vpop.eup %954 }
 0x2f0   :  { %v638_v15 = vpop.xlane.xlu0 %637  ;;  %v647_v5 = vmul.f32 %v955_v47, %v947_v60 }
 0x2f1   :  { %956 = vrcp.f32 %v638_v15 }
 0x2f2   :  { %904 = vmatmul.msk.f32.gmra.mxu2 %vm605_vm14, %v647_v5 }
 0x2f7   :  { %v957_v50 = vpop.eup %956 }
 0x2f8   :  { %v641_v18 = vpop.xlane.xlu1 %640  ;;  %v648_v7 = vmul.f32 %v957_v50, %v949_v9 }
 0x2f9   :  { %958 = vrcp.f32 %v641_v18 }
 0x2fa   :  { %905 = vmatmul.msk.f32.gmra.mxu2 %vm605_vm14, %v648_v7 }
 0x2ff   :  { %v959_v30 = vpop.eup %958 }
 0x300   :  { %v649_v55 = vmul.f32 %v959_v30, %v951_v12 }
 0x302   :  { %906 = vmatmul.msk.f32.gmra.mxu2 %vm605_vm14, %v649_v55  ;;  %vm1784_vm14 = vmmov %vm1782_vm2 }
 0x36d   :  { %v727_v22 = vpop.f32.mrf.mxu2 }
 0x36e   :  { %v739_v59 = vmul.f32 %v727_v22, %v1569_v10 }
 0x370   :  { %759 = vmatmul.f32.vlgmr.msra.gmra.mxu3 %v739_v59 }
 0x375   :  { %v730_v24 = vpop.f32.mrf.mxu2 }
 0x376   :  { %v740_v63 = vmul.f32 %v730_v24, %v1575_v4 }
 0x378   :  { %762 = vmatmul.f32.gmra.mxu3 %v740_v63 }
 0x37d   :  { %v733_v31 = vpop.f32.mrf.mxu2 }
 0x37e   :  { %v741_v32 = vmul.f32 %v733_v31, %v1578_v41 }
 0x380   :  { %765 = vmatmul.f32.gmra.mxu3 %v741_v32 }
 0x385   :  { %v736_v3 = vpop.f32.mrf.mxu2 }
 0x386   :  { %v742_v35 = vmul.f32 %v736_v3, %v1581_v25 }
 0x388   :  { %768 = vmatmul.f32.gmra.mxu3 %v742_v35 }
 0x3f3   :  { %v760_v6 = vpop.f32.mrf.mxu3 }
 0x3f4   :  { %772 = vst.msk [vmem:[#allocation2] sm:$0xff] %vm1782_vm2, %v760_v6 }
 0x3fb   :  { %v763_v36 = vpop.f32.mrf.mxu3 }
 0x3fc   :  { %773 = vst.msk [vmem:[#allocation2 + $0x8] sm:$0xff] %vm1783_vm5, %v763_v36 }
 0x403   :  { %v766_v10 = vpop.f32.mrf.mxu3 }
 0x404   :  { %774 = vst.msk [vmem:[#allocation2 + $0x10] sm:$0xff] %vm1784_vm14, %v766_v10 }
 0x40b   :  { %v769_v4 = vpop.f32.mrf.mxu3 }
 0x40c   :  { %775 = vst.msk [vmem:[#allocation2 + $0x18] sm:$0xff] %vm1785_vm11, %v769_v4 }
 0x40d   :  { %788 = dma.vmem_to_hbm [thread:$0]  %s781_s2, 512, %s783_s25, [#allocation3], %s989_s26, %s989_s26, %s990_s3  }
 0x40e   :  { %984 = dma.done.wait [#allocation3], 512  }
 0x40f   :  { %985 = vsyncadd [#allocation3], 4294966784 }
 0x410   :  { %793 = vsyncpa [#allocation3], 1 }

</bundles_post_ra>
